<compile_context>
chip_gen: v7x
topology: tpu7x:2x2x1
jax: 0.10.0
libtpu: 0.0.40
codegen_flags: <defaults>
</compile_context>

<pallas_src>
import functools
from typing import List

import jax
import jax.numpy as jnp
from jax.experimental import pallas as pl
from jax.experimental.pallas import tpu as pltpu


# ----------------------------- activation table -----------------------------
ACT2FN = {
    "linear": lambda x: x,
    "relu": lambda x: jnp.maximum(x, 0),
    "gelu": jax.nn.gelu,
    "tanh": jnp.tanh,
    "silu": jax.nn.silu,
}

_LANE = 128      # lane width (last-dim tiling unit)
_SUBLANE = 8     # sublane width (second-to-last-dim tiling unit)

# Conservative scoped-VMEM ceiling that is safe on every generation
# (v5e/v6e: 128 MiB physical, v7x: 64 MiB physical).
_VMEM_LIMIT_BYTES = 48 * 1024 * 1024
# Fused path: total weight bytes * 2 (BlockSpec double-buffers inputs) must fit
# this, leaving headroom for x / output / intermediate tiles even on v7x.
_FUSED_WEIGHT_BUDGET = 24 * 1024 * 1024


def _round_up(x: int, m: int) -> int:
    return (x + m - 1) // m * m


def _choose_tm(m: int) -> int:
    """Largest row tile <= 512 that still gives >= 2 grid steps when possible."""
    m_pad = _round_up(m, _SUBLANE)
    if m_pad <= _SUBLANE:
        return m_pad
    tm = 512
    while tm > _SUBLANE and m_pad < 2 * tm:
        tm //= 2
    return tm


def _apply_act(h, act_name: str):
    if act_name == "linear":
        return h  # identity: zero VPU work
    # Elementwise/transcendental math in f32 (v5e VPU/EUP lack bf16), then cast
    # back so the MXU still sees its native operand dtype.
    return ACT2FN[act_name](h.astype(jnp.float32)).astype(h.dtype)


# -------------------- fused whole-stack kernel (primary path) ----------------
def _fused_mlp_kernel(*refs, act_name: str, num_layers: int):
    """o = (... act(act(x) @ W0) @ W1 ...) — all layers in one kernel body."""
    x_ref = refs[0]
    w_refs = refs[1:1 + num_layers]
    o_ref = refs[1 + num_layers]

    compute_dtype = x_ref.dtype
    h = x_ref[...]
    for w_ref in w_refs:
        h = _apply_act(h, act_name)
        # dropout: p == 0 -> identity (asserted in the wrapper).
        # TODO(synk): dropout p > 0 would need pltpu.prng_seed / prng_random_bits.
        h = jnp.dot(h, w_ref[...], preferred_element_type=jnp.float32)
        h = h.astype(compute_dtype)  # keep the layer-wise dtype convention
    o_ref[...] = h.astype(o_ref.dtype)


def _fused_mlp_forward(x_pad, weights_pad, act_name: str, tm: int):
    m, k_in = x_pad.shape
    n_out = weights_pad[-1].shape[1]
    num_layers = len(weights_pad)

    kernel = functools.partial(
        _fused_mlp_kernel, act_name=act_name, num_layers=num_layers)

    in_specs = [pl.BlockSpec((tm, k_in), lambda i: (i, 0))]
    for w in weights_pad:
        kw, nw = w.shape
        # full weight resident, constant block index -> DMA'd once, reused per tile
        in_specs.append(pl.BlockSpec((kw, nw), lambda i: (0, 0)))

    return pl.pallas_call(
        kernel,
        out_shape=jax.ShapeDtypeStruct((m, n_out), x_pad.dtype),
        grid_spec=pltpu.PrefetchScalarGridSpec(
            num_scalar_prefetch=0,
            grid=(pl.cdiv(m, tm),),
            in_specs=in_specs,
            out_specs=pl.BlockSpec((tm, n_out), lambda i: (i, 0)),
        ),
        compiler_params=pltpu.CompilerParams(
            dimension_semantics=("parallel",),
            vmem_limit_bytes=_VMEM_LIMIT_BYTES,
        ),
    )(x_pad, *weights_pad)


# ------------- M/N/K-tiled per-layer kernel (large-weight fallback) ----------
def _mlp_layer_tiled_kernel(x_ref, w_ref, o_ref, acc_ref, *, act_name: str):
    k = pl.program_id(2)

    @pl.when(k == 0)
    def _():
        acc_ref[...] = jnp.zeros_like(acc_ref)

    h = _apply_act(x_ref[...], act_name)   # elementwise -> valid per K-block
    acc_ref[...] += jnp.dot(h, w_ref[...], preferred_element_type=jnp.float32)

    @pl.when(k == pl.num_programs(2) - 1)
    def _():
        o_ref[...] = acc_ref[...].astype(o_ref.dtype)


def _mlp_layer_tiled(x, w, act_name: str, *, tm: int = 256, tn: int = 256,
                     tk: int = 512):
    """One layer: o = act(x) @ W, tiled over (M, N, K) with an f32 accumulator."""
    m, k_dim = x.shape
    k2, n_dim = w.shape
    assert k_dim == k2
    tm = min(tm, _round_up(m, _SUBLANE))
    tn = min(tn, n_dim)
    tk = min(tk, k_dim)

    kernel = functools.partial(_mlp_layer_tiled_kernel, act_name=act_name)
    return pl.pallas_call(
        kernel,
        out_shape=jax.ShapeDtypeStruct((m, n_dim), x.dtype),
        grid_spec=pltpu.PrefetchScalarGridSpec(
            num_scalar_prefetch=0,
            grid=(pl.cdiv(m, tm), pl.cdiv(n_dim, tn), pl.cdiv(k_dim, tk)),
            in_specs=[
                pl.BlockSpec((tm, tk), lambda i, j, k: (i, k)),
                pl.BlockSpec((tk, tn), lambda i, j, k: (k, j)),
            ],
            out_specs=pl.BlockSpec((tm, tn), lambda i, j, k: (i, j)),
            scratch_shapes=[pltpu.VMEM((tm, tn), jnp.float32)],
        ),
        compiler_params=pltpu.CompilerParams(
            dimension_semantics=("parallel", "parallel", "arbitrary"),
            vmem_limit_bytes=_VMEM_LIMIT_BYTES,
        ),
    )(x, w)


# ------------------------------- MLP wrapper ---------------------------------
class MLP:
    """JAX/Pallas port of the PyTorch MLP module (bias=False, dropout=0)."""

    def __init__(self, in_dim: int, out_dim: int, mlp: List[int],
                 hidden_act: str = "linear", dropout: float = 0.0,
                 bias: bool = False, *, key=None, dtype=jnp.float32):
        assert not bias, "reference module is instantiated with bias=False"
        assert dropout == 0.0, "dropout > 0 (training mode) not implemented"
        self.dims = [in_dim] + list(mlp) + [out_dim]
        self.out_dim = out_dim
        self.hidden_act = hidden_act
        # lane-dense padded feature dims (multiples of 128)
        self.pdims = [_round_up(d, _LANE) for d in self.dims]
        if key is None:
            key = jax.random.PRNGKey(0)

        self.weights = []      # zero-padded (K_pad, N_pad), compute dtype
        self.weights_ref = []  # unpadded (in, out), f32 — for the pure-JAX reference
        for idx, (d_in, d_out) in enumerate(zip(self.dims[:-1], self.dims[1:])):
            key, sub = jax.random.split(key)
            # match nn.Linear default init: U(-1/sqrt(in), 1/sqrt(in)), shape (out, in)
            bound = 1.0 / (d_in ** 0.5)
            w = jax.random.uniform(sub, (d_out, d_in), dtype=jnp.float32,
                                   minval=-bound, maxval=bound)
            w_t = w.T                                   # (in, out)
            self.weights_ref.append(w_t)
            w_pad = jnp.zeros((self.pdims[idx], self.pdims[idx + 1]), dtype=dtype)
            w_pad = w_pad.at[:d_in, :d_out].set(w_t.astype(dtype))
            self.weights.append(w_pad)

    def _can_fuse(self) -> bool:
        w_bytes = sum(int(w.size) * w.dtype.itemsize for w in self.weights)
        return 2 * w_bytes <= _FUSED_WEIGHT_BUDGET   # 2x: double-buffered inputs

    def __call__(self, x):
        m, k = x.shape
        assert k == self.dims[0]
        x = x.astype(self.weights[0].dtype)
        if self.pdims[0] != k:                       # lane-pad input features
            x = jnp.pad(x, ((0, 0), (0, self.pdims[0] - k)))

        if self._can_fuse():
            y = _fused_mlp_forward(x, self.weights, self.hidden_act,
                                   tm=_choose_tm(m))
        else:
            y = x
            for w in self.weights:
                y = _mlp_layer_tiled(y, w, self.hidden_act)
        return y[:, : self.out_dim]

    def reference(self, x):
        """Pure-JAX reference mirroring the PyTorch forward (f32, unpadded)."""
        act = ACT2FN[self.hidden_act]
        h = x.astype(jnp.float32)
        for w in self.weights_ref:
            h = jnp.dot(act(h), w)
        return h


# ----------------------------------- main ------------------------------------
if __name__ == "__main__":
    key = jax.random.PRNGKey(0)
    k_x1, k_p1, k_x2, k_p2, k_x3, k_p3 = jax.random.split(key, 6)

    # 1) small demo matching the original module usage (fused path, f32, linear)
    batch, in_dim, out_dim = 8, 32, 24
    model = MLP(in_dim, out_dim, [64, 48], hidden_act="linear",
                dropout=0.0, bias=False, key=k_p1)
    x = jax.random.normal(k_x1, (batch, in_dim), dtype=jnp.float32)
    y = jax.block_until_ready(model(x))
    y_ref = model.reference(x)
    assert y.shape == (batch, out_dim)
    assert jnp.allclose(y, y_ref, atol=1e-4, rtol=1e-4), "fused f32 mismatch"

    # 2) exercise the M/N/K-tiled fallback path (nonlinear act, f32, K-accumulation)
    model2 = MLP(200, 160, [300], hidden_act="gelu",
                 dropout=0.0, bias=False, key=k_p2)
    x2 = jax.random.normal(k_x2, (96, 200), dtype=jnp.float32)
    x2p = jnp.pad(x2, ((0, 0), (0, model2.pdims[0] - 200)))
    y2 = x2p
    for w in model2.weights:
        y2 = _mlp_layer_tiled(y2, w, model2.hidden_act, tm=32, tn=128, tk=128)
    y2 = jax.block_until_ready(y2[:, :160])
    y2_ref = model2.reference(x2)
    assert jnp.allclose(y2, y2_ref, atol=1e-4, rtol=1e-4), "tiled f32 mismatch"

    # 3) bf16 weights fed straight to the MXU (no f32 up-cast), fused path
    model3 = MLP(128, 128, [256], hidden_act="relu",
                 dropout=0.0, bias=False, key=k_p3, dtype=jnp.bfloat16)
    x3 = jax.random.normal(k_x3, (16, 128), dtype=jnp.float32)
    y3 = jax.block_until_ready(model3(x3)).astype(jnp.float32)
    y3_ref = model3.reference(x3)
    assert jnp.allclose(y3, y3_ref, atol=5e-2, rtol=5e-2), "fused bf16 mismatch"

    print("KERNEL_OK")
</pallas_src>

<mosaic_0001>
module attributes {stable_mosaic.version = 11 : i64} {
  func.func @_fused_mlp_kernel(%arg0: i32, %arg1: memref<8x128xf32, #tpu.memory_space<vmem>>, %arg2: memref<128x128xf32, #tpu.memory_space<vmem>>, %arg3: memref<128x128xf32, #tpu.memory_space<vmem>>, %arg4: memref<128x128xf32, #tpu.memory_space<vmem>>, %arg5: memref<8x128xf32, #tpu.memory_space<vmem>>) attributes {dimension_semantics = [#tpu.dimension_semantics<parallel>], iteration_bounds = array<i64: 1>, scalar_prefetch = 0 : i64, scratch_operands = 0 : i64, tpu.core_type = #tpu.core_type<tc>, window_params = [{transform_indices = @transform_0, window_bounds = array<i64: 8, 128>}, {pipeline_mode = #tpu.pipeline_mode<synchronous>, transform_indices = @transform_1, window_bounds = array<i64: 128, 128>}, {pipeline_mode = #tpu.pipeline_mode<synchronous>, transform_indices = @transform_2, window_bounds = array<i64: 128, 128>}, {pipeline_mode = #tpu.pipeline_mode<synchronous>, transform_indices = @transform_3, window_bounds = array<i64: 128, 128>}, {transform_indices = @transform_4, window_bounds = array<i64: 8, 128>}]} {
    %c0 = arith.constant 0 : index
    %c0_0 = arith.constant 0 : index
    %0 = vector.load %arg1[%c0, %c0_0] : memref<8x128xf32, #tpu.memory_space<vmem>>, vector<8x128xf32>
    %c0_1 = arith.constant 0 : index
    %c0_2 = arith.constant 0 : index
    %1 = vector.load %arg2[%c0_1, %c0_2] : memref<128x128xf32, #tpu.memory_space<vmem>>, vector<128x128xf32>
    %cst = arith.constant dense<0.000000e+00> : vector<8x128xf32>
    %2 = tpu.matmul %0, %1, %cst {dimension_numbers = #tpu.dot_dimension_numbers<[1], [0], [0], [1], [0, 0, 1, 1], [], []>} : vector<8x128xf32>, vector<128x128xf32>, vector<8x128xf32> -> vector<8x128xf32>
    %c0_3 = arith.constant 0 : index
    %c0_4 = arith.constant 0 : index
    %3 = vector.load %arg3[%c0_3, %c0_4] : memref<128x128xf32, #tpu.memory_space<vmem>>, vector<128x128xf32>
    %cst_5 = arith.constant dense<0.000000e+00> : vector<8x128xf32>
    %4 = tpu.matmul %2, %3, %cst_5 {dimension_numbers = #tpu.dot_dimension_numbers<[1], [0], [0], [1], [0, 0, 1, 1], [], []>} : vector<8x128xf32>, vector<128x128xf32>, vector<8x128xf32> -> vector<8x128xf32>
    %c0_6 = arith.constant 0 : index
    %c0_7 = arith.constant 0 : index
    %5 = vector.load %arg4[%c0_6, %c0_7] : memref<128x128xf32, #tpu.memory_space<vmem>>, vector<128x128xf32>
    %cst_8 = arith.constant dense<0.000000e+00> : vector<8x128xf32>
    %6 = tpu.matmul %4, %5, %cst_8 {dimension_numbers = #tpu.dot_dimension_numbers<[1], [0], [0], [1], [0, 0, 1, 1], [], []>} : vector<8x128xf32>, vector<128x128xf32>, vector<8x128xf32> -> vector<8x128xf32>
    %c0_9 = arith.constant 0 : index
    %c0_10 = arith.constant 0 : index
    %7 = vector.load %arg5[%c0_9, %c0_10] : memref<8x128xf32, #tpu.memory_space<vmem>>, vector<8x128xf32>
    tpu.vector_store %arg5[%c0_9, %c0_10], %6 {strides = array<i32>} : memref<8x128xf32, #tpu.memory_space<vmem>>, vector<8x128xf32>,
    return
  }
  func.func @transform_0(%arg0: i32) -> (i32, i32) {
    %c0_i32 = arith.constant 0 : i32
    %c0_i32_0 = arith.constant 0 : i32
    return %arg0, %c0_i32 : i32, i32
  }
  func.func @transform_1(%arg0: i32) -> (i32, i32) {
    %c0_i32 = arith.constant 0 : i32
    %c0_i32_0 = arith.constant 0 : i32
    %c0_i32_1 = arith.constant 0 : i32
    return %c0_i32, %c0_i32_0 : i32, i32
  }
  func.func @transform_2(%arg0: i32) -> (i32, i32) {
    %c0_i32 = arith.constant 0 : i32
    %c0_i32_0 = arith.constant 0 : i32
    %c0_i32_1 = arith.constant 0 : i32
    return %c0_i32, %c0_i32_0 : i32, i32
  }
  func.func @transform_3(%arg0: i32) -> (i32, i32) {
    %c0_i32 = arith.constant 0 : i32
    %c0_i32_0 = arith.constant 0 : i32
    %c0_i32_1 = arith.constant 0 : i32
    return %c0_i32, %c0_i32_0 : i32, i32
  }
  func.func @transform_4(%arg0: i32) -> (i32, i32) {
    %c0_i32 = arith.constant 0 : i32
    %c0_i32_0 = arith.constant 0 : i32
    return %arg0, %c0_i32 : i32, i32
  }
}

</mosaic_0001>

<bundles_post_ra>
// kernel: tpu_custom_call.1
= control target key start
LH: loop header
LB: loop body
LE: loop exit
PB: predicated region body
PF: predicated region fallthrough
CT: control target
= control target key end

     0   :  { %9 = vsyncpa [#allocation3], 0  ;;  %s838_s0 = inlined_call_operand.hbm [shape: f32[8,128], index: 0, kind: input, shape index: {}]   ;;  %s839_s1 = inlined_call_operand.hbm [shape: f32[128,128], index: 1, kind: input, shape index: {}]   ;;  %s840_s2 = inlined_call_operand.hbm [shape: f32[128,128], index: 2, kind: input, shape index: {}]   ;;  %s841_s3 = inlined_call_operand.hbm [shape: f32[128,128], index: 3, kind: input, shape index: {}]   ;;  %s842_s4 = inlined_call_operand.hbm [shape: f32[8,128], index: 4, kind: output, shape index: {}]  }
   0x1   :  { %10 = vsyncpa [#allocation6], 0 }
   0x2   :  { %11 = vsyncpa [#allocation9], 0 }
   0x3   :  { %12 = vsyncpa [#allocation4], 0  ;;  %s704_s15 = smov [#allocation5]   ;;  %s586_s19 = scalar_lea.hbm %s839_s1, 2048 }
   0x4   :  { %s28_s16 = sshll.u32 %s704_s15, 4  ;;  %p587_p0 = scmp.ne.s32.totalorder %s839_s1, %s586_s19  ;;  %s29_s16 = int_to_ptr.vmem [resolvable:$true] %s28_s16 }
   0x5   :  { %p590_p1 = scmp.lt.u32.totalorder %s586_s19, %s839_s1 }
   0x7   :  { %p592_p2 = pnand %p590_p1, %p587_p0 }
   0x9   :  { %595 = shalt.err (!%p592_p2)
}
   0xa   :  { %s596_s24 = scalar_lea.vmem %s29_s16, 2048  ;;  %p601_p4 = scmp.lt.s32.totalorder %s29_s16, %s29_s16 }
   0xb   :  { %p597_p3 = scmp.ne.s32.totalorder %s29_s16, %s596_s24  ;;  %p602_p5 = scmp.lt.s32.totalorder %s596_s24, %s596_s24 }
   0xd   :  { %p603_p6 = por %p602_p5, %p601_p4 }
   0xf   :  { %p604_p7 = pnand %p603_p6, %p597_p3 }
  0x11   :  { %607 = shalt.err (!%p604_p7)
}
  0x12   :  { %s705_s25 = smov 128   ;;  %s706_s26 = smov 8  }
  0x13   :  { %34 = dma.hbm_to_vmem [thread:$0]  %s839_s1, 2048, %s29_s16, [#allocation6], %s705_s25, %s705_s25, %s706_s26  }
  0x14   :  { %s707_s29 = smov [#allocation2]   ;;  %s708_s5 = smov [#allocation7]  }
  0x15   :  { %s19_s30 = sshll.u32 %s707_s29, 4  ;;  %s40_s6 = sshll.u32 %s708_s5, 4  ;;  %s20_s30 = int_to_ptr.vmem [resolvable:$true] %s19_s30  ;;  %s41_s6 = int_to_ptr.vmem [resolvable:$true] %s40_s6 }
  0x16   :  { %s608_s9 = scalar_lea.hbm %s838_s0, 128 }
  0x17   :  { %p609_p8 = scmp.ne.s32.totalorder %s838_s0, %s608_s9  ;;  %p612_p9 = scmp.lt.u32.totalorder %s608_s9, %s838_s0 }
  0x19   :  { %p614_p10 = pnand %p612_p9, %p609_p8 }
  0x1b   :  { %617 = shalt.err (!%p614_p10)
}
  0x1c   :  { %s618_s1 = scalar_lea.vmem %s20_s30, 128  ;;  %p623_p12 = scmp.lt.s32.totalorder %s20_s30, %s20_s30 }
  0x1d   :  { %p619_p11 = scmp.ne.s32.totalorder %s20_s30, %s618_s1  ;;  %p624_p13 = scmp.lt.s32.totalorder %s618_s1, %s618_s1 }
  0x1f   :  { %p625_p0 = por %p624_p13, %p623_p12 }
  0x21   :  { %p626_p1 = pnand %p625_p0, %p619_p11 }
  0x23   :  { %629 = shalt.err (!%p626_p1)
}
  0x24   :  { %22 = dma.hbm_to_vmem [thread:$0]  %s838_s0, 128, %s20_s30, [#allocation3]  }
  0x25   :  { %s630_s18 = scalar_lea.hbm %s840_s2, 2048 }
  0x26   :  { %p631_p2 = scmp.ne.s32.totalorder %s840_s2, %s630_s18  ;;  %p634_p3 = scmp.lt.u32.totalorder %s630_s18, %s840_s2 }
  0x28   :  { %p636_p4 = pnand %p634_p3, %p631_p2 }
  0x2a   :  { %639 = shalt.err (!%p636_p4)
}
  0x2b   :  { %s640_s23 = scalar_lea.vmem %s41_s6, 2048  ;;  %p645_p6 = scmp.lt.s32.totalorder %s41_s6, %s41_s6 }
  0x2c   :  { %p641_p5 = scmp.ne.s32.totalorder %s41_s6, %s640_s23  ;;  %p646_p7 = scmp.lt.s32.totalorder %s640_s23, %s640_s23 }
  0x2e   :  { %p647_p8 = por %p646_p7, %p645_p6 }
  0x30   :  { %p648_p9 = pnand %p647_p8, %p641_p5 }
  0x32   :  { %651 = shalt.err (!%p648_p9)
}
  0x33   :  { %46 = dma.hbm_to_vmem [thread:$0]  %s840_s2, 2048, %s41_s6, [#allocation6], %s705_s25, %s705_s25, %s706_s26  }
  0x34   :  { %s709_s27 = smov [#allocation8]   ;;  %s652_s5 = scalar_lea.hbm %s841_s3, 2048 }
  0x35   :  { %s52_s28 = sshll.u32 %s709_s27, 4  ;;  %p653_p10 = scmp.ne.s32.totalorder %s841_s3, %s652_s5  ;;  %s53_s28 = int_to_ptr.vmem [resolvable:$true] %s52_s28 }
  0x36   :  { %p656_p11 = scmp.lt.u32.totalorder %s652_s5, %s841_s3 }
  0x38   :  { %p658_p12 = pnand %p656_p11, %p653_p10 }
  0x3a   :  { %661 = shalt.err (!%p658_p12)
}
  0x3b   :  { %s662_s11 = scalar_lea.vmem %s53_s28, 2048  ;;  %p667_p0 = scmp.lt.s32.totalorder %s53_s28, %s53_s28 }
  0x3c   :  { %p663_p13 = scmp.ne.s32.totalorder %s53_s28, %s662_s11  ;;  %p668_p1 = scmp.lt.s32.totalorder %s662_s11, %s662_s11 }
  0x3e   :  { %p669_p2 = por %p668_p1, %p667_p0 }
  0x40   :  { %p670_p3 = pnand %p669_p2, %p663_p13 }
  0x42   :  { %673 = shalt.err (!%p670_p3)
}
  0x43   :  { %58 = dma.hbm_to_vmem [thread:$0]  %s841_s3, 2048, %s53_s28, [#allocation9], %s705_s25, %s705_s25, %s706_s26  }
  0x44   :  { %696 = dma.done.wait [#allocation3], 128  }
  0x45   :  { %697 = vsyncadd [#allocation3], 4294967168 }
  0x46   :  { %698 = dma.done.wait [#allocation6], 4096  }
  0x47   :  { %699 = vsyncadd [#allocation6], 4294963200 }
  0x48   :  { %700 = dma.done.wait [#allocation9], 2048  }
  0x49   :  { %701 = vsyncadd [#allocation9], 4294965248  ;;  %v710_v0 = vmov 0.0|0.0   ;;  %vm711_vm0 = vmmov 0   ;;  %v712_v1 = vmov 0.0   ;;  %v72_v2 = vld [vmem:[#allocation5] sm:$0xff] }
  0x4a   :  { %504 = vmatprep.subr.bf16.mxu0 %v710_v0  ;;  %431 = vmatprep.mubr.msk.f32.mxu0 %vm711_vm0, %v712_v1  ;;  %v73_v3 = vld [vmem:[#allocation5 + $0x8] sm:$0xff]  ;;  %v74_v4 = vld [vmem:[#allocation5 + $0x10] sm:$0xff]  ;;  %v75_v6 = vld [vmem:[#allocation5 + $0x18] sm:$0xff]  ;;  %s713_s3 = smov [#allocation10]  }
  0x4b   :  { %528 = vmatprep.subr.bf16.mxu1 %v710_v0  ;;  %466 = vmatprep.mubr.msk.f32.mxu1 %vm711_vm0, %v712_v1  ;;  %v505_v5 = vpack.c.bf16 %v73_v3, %v72_v2  ;;  %v508_v7 = vpack.c.bf16 %v75_v6, %v74_v4  ;;  %v76_v8 = vld [vmem:[#allocation5 + $0x20] sm:$0xff]  ;;  %v77_v9 = vld [vmem:[#allocation5 + $0x28] sm:$0xff]  ;;  %v160_v12 = vld [vmem:[#allocation7 + $0x10] sm:$0xff]  ;;  %s337_s25 = sshll.u32 %s713_s3, 4  ;;  %s338_s25 = int_to_ptr.vmem [resolvable:$true] %s337_s25 }
  0x4c   :  { %v158_v10 = vld [vmem:[#allocation7] sm:$0xff]  ;;  %v159_v11 = vld [vmem:[#allocation7 + $0x8] sm:$0xff]  ;;  %v161_v13 = vld [vmem:[#allocation7 + $0x18] sm:$0xff]  ;;  %v511_v14 = vpack.c.bf16 %v77_v9, %v76_v8  ;;  %s674_s26 = scalar_lea.vmem %s338_s25, 128  ;;  %p679_p5 = scmp.lt.s32.totalorder %s338_s25, %s338_s25 }
  0x4d   :  { %506 = vmatpush3.bf16.msra.mxu0 %v505_v5  ;;  %v529_v15 = vpack.c.bf16 %v159_v11, %v158_v10  ;;  %v78_v16 = vld [vmem:[#allocation5 + $0x30] sm:$0xff]  ;;  %v79_v17 = vld [vmem:[#allocation5 + $0x38] sm:$0xff]  ;;  %v532_v18 = vpack.c.bf16 %v161_v13, %v160_v12  ;;  %v162_v19 = vld [vmem:[#allocation7 + $0x20] sm:$0xff]  ;;  %p675_p4 = scmp.ne.s32.totalorder %s338_s25, %s674_s26  ;;  %p680_p6 = scmp.lt.s32.totalorder %s674_s26, %s674_s26 }
  0x4e   :  { %507 = vmatprep.subr.bf16.mxu0 %v710_v0  ;;  %v163_v20 = vld [vmem:[#allocation7 + $0x28] sm:$0xff]  ;;  %v514_v21 = vpack.c.bf16 %v79_v17, %v78_v16  ;;  %v80_v22 = vld [vmem:[#allocation5 + $0x40] sm:$0xff]  ;;  %v164_v25 = vld [vmem:[#allocation7 + $0x30] sm:$0xff] }
  0x4f   :  { %530 = vmatpush3.bf16.msra.mxu1 %v529_v15  ;;  %v81_v23 = vld [vmem:[#allocation5 + $0x48] sm:$0xff]  ;;  %v535_v24 = vpack.c.bf16 %v163_v20, %v162_v19  ;;  %v165_v26 = vld [vmem:[#allocation7 + $0x38] sm:$0xff]  ;;  %v82_v28 = vld [vmem:[#allocation5 + $0x50] sm:$0xff]  ;;  %p681_p7 = por %p680_p6, %p679_p5 }
  0x50   :  { %531 = vmatprep.subr.bf16.mxu1 %v710_v0  ;;  %v517_v27 = vpack.c.bf16 %v81_v23, %v80_v22  ;;  %v83_v29 = vld [vmem:[#allocation5 + $0x58] sm:$0xff]  ;;  %v538_v30 = vpack.c.bf16 %v165_v26, %v164_v25  ;;  %v166_v31 = vld [vmem:[#allocation7 + $0x40] sm:$0xff]  ;;  %v167_v32 = vld [vmem:[#allocation7 + $0x48] sm:$0xff] }
  0x51   :  { %509 = vmatpush3.bf16.msra.mxu0 %v508_v7  ;;  %v520_v33 = vpack.c.bf16 %v83_v29, %v82_v28  ;;  %v84_v34 = vld [vmem:[#allocation5 + $0x60] sm:$0xff]  ;;  %v85_v35 = vld [vmem:[#allocation5 + $0x68] sm:$0xff]  ;;  %v541_v36 = vpack.c.bf16 %v167_v32, %v166_v31  ;;  %v168_v37 = vld [vmem:[#allocation7 + $0x50] sm:$0xff]  ;;  %p682_p8 = pnand %p681_p7, %p675_p4 }
  0x52   :  { %510 = vmatprep.subr.bf16.mxu0 %v710_v0  ;;  %v169_v38 = vld [vmem:[#allocation7 + $0x58] sm:$0xff]  ;;  %v523_v39 = vpack.c.bf16 %v85_v35, %v84_v34  ;;  %v86_v40 = vld [vmem:[#allocation5 + $0x70] sm:$0xff]  ;;  %v170_v43 = vld [vmem:[#allocation7 + $0x60] sm:$0xff] }
  0x53   :  { %533 = vmatpush3.bf16.msra.mxu1 %v532_v18  ;;  %v87_v41 = vld [vmem:[#allocation5 + $0x78] sm:$0xff]  ;;  %v544_v42 = vpack.c.bf16 %v169_v38, %v168_v37  ;;  %v171_v44 = vld [vmem:[#allocation7 + $0x68] sm:$0xff]  ;;  %v172_v47 = vld [vmem:[#allocation7 + $0x70] sm:$0xff] }
  0x54   :  { %534 = vmatprep.subr.bf16.mxu1 %v710_v0  ;;  %v526_v45 = vpack.c.bf16 %v87_v41, %v86_v40  ;;  %v547_v46 = vpack.c.bf16 %v171_v44, %v170_v43  ;;  %v173_v48 = vld [vmem:[#allocation7 + $0x78] sm:$0xff]  ;;  %v244_v51 = vld [vmem:[#allocation8] sm:$0xff]  ;;  %v245_v52 = vld [vmem:[#allocation8 + $0x8] sm:$0xff] }
  0x55   :  { %512 = vmatpush3.bf16.msra.mxu0 %v511_v14  ;;  %v71_v49 = vld [vmem:[#allocation2] sm:$0xff]  ;;  %v550_v50 = vpack.c.bf16 %v173_v48, %v172_v47  ;;  %v246_v53 = vld [vmem:[#allocation8 + $0x10] sm:$0xff]  ;;  %v553_v54 = vpack.c.bf16 %v245_v52, %v244_v51  ;;  %v248_v57 = vld [vmem:[#allocation8 + $0x20] sm:$0xff] }
  0x56   :  { %513 = vmatprep.subr.bf16.mxu0 %v710_v0  ;;  %v247_v55 = vld [vmem:[#allocation8 + $0x18] sm:$0xff]  ;;  %v249_v58 = vld [vmem:[#allocation8 + $0x28] sm:$0xff]  ;;  %v250_v60 = vld [vmem:[#allocation8 + $0x30] sm:$0xff] }
  0x57   :  { %536 = vmatpush3.bf16.msra.mxu1 %v535_v24  ;;  %v556_v56 = vpack.c.bf16 %v247_v55, %v246_v53  ;;  %v559_v59 = vpack.c.bf16 %v249_v58, %v248_v57  ;;  %v251_v61 = vld [vmem:[#allocation8 + $0x38] sm:$0xff]  ;;  %v252_v63 = vld [vmem:[#allocation8 + $0x40] sm:$0xff]  ;;  %v254_v3 = vld [vmem:[#allocation8 + $0x50] sm:$0xff] }
  0x58   :  { %537 = vmatprep.subr.bf16.mxu1 %v710_v0  ;;  %v562_v62 = vpack.c.bf16 %v251_v61, %v250_v60  ;;  %v255_v4 = vld [vmem:[#allocation8 + $0x58] sm:$0xff]  ;;  %v256_v6 = vld [vmem:[#allocation8 + $0x60] sm:$0xff]  ;;  %v257_v7 = vld [vmem:[#allocation8 + $0x68] sm:$0xff] }
  0x59   :  { %515 = vmatpush3.bf16.msra.mxu0 %v514_v21  ;;  %v568_v5 = vpack.c.bf16 %v255_v4, %v254_v3  ;;  %v571_v8 = vpack.c.bf16 %v257_v7, %v256_v6  ;;  %v258_v9 = vld [vmem:[#allocation8 + $0x70] sm:$0xff]  ;;  %v259_v10 = vld [vmem:[#allocation8 + $0x78] sm:$0xff] }
  0x5a   :  { %516 = vmatprep.subr.bf16.mxu0 %v710_v0  ;;  %v574_v11 = vpack.c.bf16 %v259_v10, %v258_v9 }
  0x5b   :  { %539 = vmatpush3.bf16.msra.mxu1 %v538_v30 }
  0x5c   :  { %540 = vmatprep.subr.bf16.mxu1 %v710_v0 }
  0x5d   :  { %518 = vmatpush3.bf16.msra.mxu0 %v517_v27 }
  0x5e   :  { %519 = vmatprep.subr.bf16.mxu0 %v710_v0 }
  0x5f   :  { %542 = vmatpush3.bf16.msra.mxu1 %v541_v36 }
  0x60   :  { %543 = vmatprep.subr.bf16.mxu1 %v710_v0 }
  0x61   :  { %521 = vmatpush3.bf16.msra.mxu0 %v520_v33 }
  0x62   :  { %522 = vmatprep.subr.bf16.mxu0 %v710_v0 }
  0x63   :  { %545 = vmatpush3.bf16.msra.mxu1 %v544_v42 }
  0x64   :  { %546 = vmatprep.subr.bf16.mxu1 %v710_v0 }
  0x65   :  { %524 = vmatpush3.bf16.msra.mxu0 %v523_v39 }
  0x66   :  { %525 = vmatprep.subr.bf16.mxu0 %v710_v0 }
  0x67   :  { %548 = vmatpush3.bf16.msra.mxu1 %v547_v46 }
  0x68   :  { %549 = vmatprep.subr.bf16.mxu1 %v710_v0 }
  0x69   :  { %527 = vmatpush3.bf16.msra.mxu0 %v526_v45 }
  0x6a   :  { %552 = vmatprep.subr.bf16.mxu0 %v710_v0 }
  0x6b   :  { %551 = vmatpush3.bf16.msra.mxu1 %v550_v50 }
  0x6c   :  { %432 = vmatmul.mubr.f32.vlgmr.msra.gmra.mrb[0].mxu0 %v71_v49 }
  0x6d   :  { %501 = vmatprep.mubr.msk.f32.mxu0 %vm711_vm0, %v712_v1  ;;  %554 = vmatpush3.bf16.msra.mxu0 %v553_v54  ;;  %v253_v1 = vld [vmem:[#allocation8 + $0x48] sm:$0xff] }
  0x6e   :  { %555 = vmatprep.subr.bf16.mxu0 %v710_v0  ;;  %v565_v2 = vpack.c.bf16 %v253_v1, %v252_v63 }
  0x71   :  { %557 = vmatpush3.bf16.msra.mxu0 %v556_v56 }
  0x72   :  { %558 = vmatprep.subr.bf16.mxu0 %v710_v0 }
  0x75   :  { %560 = vmatpush3.bf16.msra.mxu0 %v559_v59 }
  0x76   :  { %561 = vmatprep.subr.bf16.mxu0 %v710_v0 }
  0x79   :  { %563 = vmatpush3.bf16.msra.mxu0 %v562_v62 }
  0x7a   :  { %564 = vmatprep.subr.bf16.mxu0 %v710_v0 }
  0x7d   :  { %566 = vmatpush3.bf16.msra.mxu0 %v565_v2 }
  0x7e   :  { %567 = vmatprep.subr.bf16.mxu0 %v710_v0 }
  0x81   :  { %569 = vmatpush3.bf16.msra.mxu0 %v568_v5 }
  0x82   :  { %570 = vmatprep.subr.bf16.mxu0 %v710_v0 }
  0x85   :  { %572 = vmatpush3.bf16.msra.mxu0 %v571_v8 }
  0x86   :  { %573 = vmatprep.subr.bf16.mxu0 %v710_v0 }
  0x89   :  { %575 = vmatpush3.bf16.msra.mxu0 %v574_v11 }
 0x13f   :  { %v154_v12 = vpop.f32.mrb[0].mxu0 }
 0x140   :  { %v433_v13 = vpop.f32.mrb[1].mxu0  ;;  %467 = vmatmul.mubr.f32.vlgmr.msra.gmra.mrb[0].mxu1 %v154_v12 }
 0x213   :  { %v240_v14 = vpop.f32.mrb[0].mxu1 }
 0x214   :  { %v468_v15 = vpop.f32.mrb[1].mxu1  ;;  %502 = vmatmul.mubr.f32.vlgmr.msra.gmra.mrb[2].mxu0 %v240_v14 }
 0x2e7   :  { %v326_v16 = vpop.f32.mrb[2].mxu0 }
 0x2e8   :  { %330 = vst [vmem:[#allocation10] sm:$0xff] %v326_v16  ;;  %v503_v17 = vpop.f32.mrb[3].mxu0 }
 0x2e9   :  { %685 = shalt.err (!%p682_p8)
}
 0x2ea   :  { %s686_s1 = scalar_lea.hbm %s842_s4, 128 }
 0x2eb   :  { %p687_p9 = scmp.ne.s32.totalorder %s842_s4, %s686_s1  ;;  %p690_p10 = scmp.lt.u32.totalorder %s686_s1, %s842_s4 }
 0x2ed   :  { %p692_p11 = pnand %p690_p10, %p687_p9 }
 0x2ef   :  { %695 = shalt.err (!%p692_p11)
}
 0x2f0   :  { %340 = dma.vmem_to_hbm [thread:$0]  %s338_s25, 128, %s842_s4, [#allocation4]  }
 0x2f1   :  { %702 = dma.done.wait [#allocation4], 128  }
 0x2f2   :  { %703 = vsyncadd [#allocation4], 4294967168 }
 0x2f3   :  { %344 = vsyncpa [#allocation3], 1 }
 0x2f4   :  { %345 = vsyncpa [#allocation6], 1 }
 0x2f5   :  { %346 = vsyncpa [#allocation9], 1 }
 0x2f6   :  { %347 = vsyncpa [#allocation4], 1 }

</bundles_post_ra>
